<compile_context>
chip_gen: v6e
topology: v6e:2x2x1
jax: 0.10.0
libtpu: 0.0.40
codegen_flags: <defaults>
</compile_context>

<pallas_src>
import jax
import jax.numpy as jnp
from jax.experimental import pallas as pl
from jax.experimental.pallas import tpu as pltpu


def self_attention_kernel(bag_ref, w1b1_ref, wc_ref, ws_ref, be_ref, out_ref):
    # bag_ref : (Bt, N, Din)  VMEM
    # w1b1_ref: (Din+1, Dout) VMEM   (W1^T with b1 appended as last row)
    # wc_ref  : (1, Dout)     VMEM   (compute_e weight, "center" half)
    # ws_ref  : (1, Dout)     VMEM   (compute_e weight, "self" half)
    # be_ref  : (1, 1)        SMEM   (compute_e bias)
    # out_ref : (Bt, Dout)    VMEM
    bt, n, d_in = bag_ref.shape
    d_out = out_ref.shape[-1]

    w1b1 = w1b1_ref[...]                       # (Din+1, Dout)
    w1 = w1b1[:d_in, :]                        # (Din, Dout)
    b1 = w1b1[d_in:, :]                        # (1, Dout)

    # ascend_dim linear + LeakyReLU(0.2) for all Bt bags in one flat matmul.
    x = bag_ref[...].reshape(bt * n, d_in).astype(jnp.float32)
    h = jnp.dot(x, w1, preferred_element_type=jnp.float32) + b1
    h = jnp.where(h >= 0.0, h, 0.2 * h)        # (Bt*N, Dout)
    h = h.reshape(bt, n, d_out)                # (Bt, N, Dout)

    w_center = wc_ref[...].reshape(1, 1, d_out)
    w_self = ws_ref[...].reshape(1, 1, d_out)

    # e_i = <w_center, h[0]> + <w_self, h[i]> + b_e   (per bag)
    center = h[:, 0:1, :]                                           # (Bt, 1, Dout)
    e_center = jnp.sum(center * w_center, axis=-1, keepdims=True)   # (Bt, 1, 1)
    e_self = jnp.sum(h * w_self, axis=-1, keepdims=True)            # (Bt, N, 1)
    e = e_self + e_center + be_ref[0, 0]                            # (Bt, N, 1)

    # stabilized softmax over the N instances of each bag
    m = jnp.max(e, axis=1, keepdims=True)                           # (Bt, 1, 1)
    p = jnp.exp(e - m)                                              # (Bt, N, 1)
    denom = jnp.sum(p, axis=1, keepdims=True)                       # (Bt, 1, 1)
    alpha = p * pl.reciprocal(denom, approx=True)                   # (Bt, N, 1)

    # aggregated instance per bag: sum_i alpha_i * h_i
    out_ref[...] = jnp.sum(alpha * h, axis=1)                       # (Bt, Dout)


def self_attention_pallas(bags, w1_pt, b1_pt, we_pt, be_pt, *, bag_tile=8):
    """bags: (B, N, Din); PyTorch-layout params:
       w1_pt (Dout, Din), b1_pt (Dout,), we_pt (1, 2*Dout), be_pt (1,).
       Returns (B, Dout) — row b is SelfAttention.forward(bags[b]) squeezed."""
    b, n, d_in = bags.shape
    d_out = w1_pt.shape[0]
    assert b % bag_tile == 0, "batch must be a multiple of bag_tile"

    # Host-side glue: fold b1 into the W1 transfer; split we into lane-aligned halves.
    w1b1 = jnp.concatenate([w1_pt.T, b1_pt.reshape(1, d_out)], axis=0)  # (Din+1, Dout)
    w_center = we_pt[:, :d_out]                                         # (1, Dout)
    w_self = we_pt[:, d_out:]                                           # (1, Dout)
    be = be_pt.reshape(1, 1)                                            # (1, 1)

    return pl.pallas_call(
        self_attention_kernel,
        grid=(b // bag_tile,),
        in_specs=[
            pl.BlockSpec((bag_tile, n, d_in), lambda i: (i, 0, 0)),
            pl.BlockSpec((d_in + 1, d_out), lambda i: (0, 0)),   # resident
            pl.BlockSpec((1, d_out), lambda i: (0, 0)),          # resident
            pl.BlockSpec((1, d_out), lambda i: (0, 0)),          # resident
            pl.BlockSpec(memory_space=pltpu.MemorySpace.SMEM),   # scalar bias
        ],
        out_specs=pl.BlockSpec((bag_tile, d_out), lambda i: (i, 0)),
        out_shape=jax.ShapeDtypeStruct((b, d_out), jnp.float32),
        compiler_params=pltpu.CompilerParams(
            dimension_semantics=("parallel",),   # shard bags across TCs on v7x
        ),
    )(bags, w1b1, w_center, w_self, be)


def self_attention_ref(bag, w1_pt, b1_pt, we_pt, be_pt):
    """Pure-JAX reference for a single bag (N, Din) -> (Dout,)."""
    h = bag @ w1_pt.T + b1_pt
    h = jnp.where(h >= 0.0, h, 0.2 * h)
    center = jnp.broadcast_to(h[0:1, :], h.shape)
    cat = jnp.concatenate([center, h], axis=1)
    e = cat @ we_pt.T + be_pt                     # (N, 1)
    alpha = jax.nn.softmax(e.reshape(1, -1), axis=1)
    return (alpha @ h)[0]                         # (Dout,)


if __name__ == "__main__":
    B = 64           # number of bags processed in one pallas_call
    BT = 8           # bags per grid step (sublane-aligned output tile)
    N = 8            # bag size (number of instances)
    D_IN = 16        # self_att_in_len
    D_OUT = 32       # self_att_out_len

    key = jax.random.PRNGKey(0)
    k_bag, k_w1, k_b1, k_we, k_be = jax.random.split(key, 5)

    bags = jax.random.normal(k_bag, (B, N, D_IN), dtype=jnp.float32)

    # nn.Linear(in=D_IN, out=D_OUT): weight (D_OUT, D_IN), bias (D_OUT,)
    w1_pt = jax.random.normal(k_w1, (D_OUT, D_IN), dtype=jnp.float32) * 0.1
    b1_pt = jax.random.normal(k_b1, (D_OUT,), dtype=jnp.float32) * 0.1
    # nn.Linear(in=2*D_OUT, out=1): weight (1, 2*D_OUT), bias (1,)
    we_pt = jax.random.normal(k_we, (1, 2 * D_OUT), dtype=jnp.float32) * 0.1
    be_pt = jax.random.normal(k_be, (1,), dtype=jnp.float32) * 0.1

    out = self_attention_pallas(bags, w1_pt, b1_pt, we_pt, be_pt, bag_tile=BT)
    out = jax.block_until_ready(out)

    ref = jax.vmap(lambda bg: self_attention_ref(bg, w1_pt, b1_pt, we_pt, be_pt))(bags)
    assert out.shape == (B, D_OUT)
    # tolerance covers pl.reciprocal(approx=True) in the softmax normalization
    assert jnp.allclose(out, ref, atol=2e-3, rtol=2e-3), (out, ref)
    print("KERNEL_OK")
</pallas_src>

<mosaic_0001>
module attributes {stable_mosaic.version = 11 : i64} {
  func.func @self_attention_kernel(%arg0: i32, %arg1: memref<8x8x16xf32, #tpu.memory_space<vmem>>, %arg2: memref<17x32xf32, #tpu.memory_space<vmem>>, %arg3: memref<1x32xf32, #tpu.memory_space<vmem>>, %arg4: memref<1x32xf32, #tpu.memory_space<vmem>>, %arg5: memref<1x1xf32, #tpu.memory_space<smem>>, %arg6: memref<8x32xf32, #tpu.memory_space<vmem>>) attributes {dimension_semantics = [#tpu.dimension_semantics<parallel>], iteration_bounds = array<i64: 8>, scalar_prefetch = 0 : i64, scratch_operands = 0 : i64, tpu.core_type = #tpu.core_type<tc>, window_params = [{transform_indices = @transform_0, window_bounds = array<i64: 8, 8, 16>}, {pipeline_mode = #tpu.pipeline_mode<synchronous>, transform_indices = @transform_1, window_bounds = array<i64: 17, 32>}, {pipeline_mode = #tpu.pipeline_mode<synchronous>, transform_indices = @transform_2, window_bounds = array<i64: 1, 32>}, {pipeline_mode = #tpu.pipeline_mode<synchronous>, transform_indices = @transform_3, window_bounds = array<i64: 1, 32>}, {transform_indices = @transform_4, window_bounds = array<i64: 1, 1>}, {transform_indices = @transform_5, window_bounds = array<i64: 8, 32>}]} {
    %c0 = arith.constant 0 : index
    %c0_0 = arith.constant 0 : index
    %0 = vector.load %arg2[%c0, %c0_0] : memref<17x32xf32, #tpu.memory_space<vmem>>, vector<17x32xf32>
    %1 = vector.extract_strided_slice %0 {offsets = [0, 0], sizes = [16, 32], strides = [1, 1]} : vector<17x32xf32> to vector<16x32xf32>
    %2 = vector.extract_strided_slice %0 {offsets = [16, 0], sizes = [1, 32], strides = [1, 1]} : vector<17x32xf32> to vector<1x32xf32>
    %c0_1 = arith.constant 0 : index
    %c0_2 = arith.constant 0 : index
    %c0_3 = arith.constant 0 : index
    %3 = vector.load %arg1[%c0_1, %c0_2, %c0_3] : memref<8x8x16xf32, #tpu.memory_space<vmem>>, vector<8x8x16xf32>
    %4 = vector.shape_cast %3 : vector<8x8x16xf32> to vector<64x16xf32>
    %cst = arith.constant dense<0.000000e+00> : vector<64x32xf32>
    %5 = tpu.matmul %4, %1, %cst {dimension_numbers = #tpu.dot_dimension_numbers<[1], [0], [0], [1], [0, 0, 1, 1], [], []>} : vector<64x16xf32>, vector<16x32xf32>, vector<64x32xf32> -> vector<64x32xf32>
    %6 = vector.broadcast %2 : vector<1x32xf32> to vector<64x32xf32>
    %7 = arith.addf %5, %6 : vector<64x32xf32>
    %cst_4 = arith.constant 0.000000e+00 : f32
    %8 = vector.broadcast %cst_4 : f32 to vector<64x32xf32>
    %9 = arith.cmpf oge, %7, %8 : vector<64x32xf32>
    %cst_5 = arith.constant 2.000000e-01 : f32
    %10 = vector.broadcast %cst_5 : f32 to vector<64x32xf32>
    %11 = arith.mulf %10, %7 : vector<64x32xf32>
    %12 = arith.select %9, %7, %11 : vector<64x32xi1>, vector<64x32xf32>
    %13 = vector.shape_cast %12 : vector<64x32xf32> to vector<8x8x32xf32>
    %c0_6 = arith.constant 0 : index
    %c0_7 = arith.constant 0 : index
    %14 = vector.load %arg3[%c0_6, %c0_7] : memref<1x32xf32, #tpu.memory_space<vmem>>, vector<1x32xf32>
    %15 = vector.shape_cast %14 : vector<1x32xf32> to vector<1x1x32xf32>
    %c0_8 = arith.constant 0 : index
    %c0_9 = arith.constant 0 : index
    %16 = vector.load %arg4[%c0_8, %c0_9] : memref<1x32xf32, #tpu.memory_space<vmem>>, vector<1x32xf32>
    %17 = vector.shape_cast %16 : vector<1x32xf32> to vector<1x1x32xf32>
    %18 = vector.extract_strided_slice %13 {offsets = [0, 0, 0], sizes = [8, 1, 32], strides = [1, 1, 1]} : vector<8x8x32xf32> to vector<8x1x32xf32>
    %19 = vector.broadcast %15 : vector<1x1x32xf32> to vector<8x1x32xf32>
    %20 = arith.mulf %18, %19 : vector<8x1x32xf32>
    %cst_10 = arith.constant dense<0.000000e+00> : vector<8x1xf32>
    %21 = vector.multi_reduction <add>, %20, %cst_10 [2] : vector<8x1x32xf32> to vector<8x1xf32>
    %22 = vector.shape_cast %21 : vector<8x1xf32> to vector<8x1x1xf32>
    %23 = vector.broadcast %17 : vector<1x1x32xf32> to vector<8x8x32xf32>
    %24 = arith.mulf %13, %23 : vector<8x8x32xf32>
    %cst_11 = arith.constant dense<0.000000e+00> : vector<8x8xf32>
    %25 = vector.multi_reduction <add>, %24, %cst_11 [2] : vector<8x8x32xf32> to vector<8x8xf32>
    %26 = vector.shape_cast %25 : vector<8x8xf32> to vector<8x8x1xf32>
    %27 = vector.broadcast %22 : vector<8x1x1xf32> to vector<8x8x1xf32>
    %28 = arith.addf %26, %27 : vector<8x8x1xf32>
    %c0_12 = arith.constant 0 : index
    %c0_13 = arith.constant 0 : index
    %29 = memref.load %arg5[%c0_12, %c0_13] : memref<1x1xf32, #tpu.memory_space<smem>>
    %30 = vector.broadcast %29 : f32 to vector<8x8x1xf32>
    %31 = arith.addf %28, %30 : vector<8x8x1xf32>
    %cst_14 = arith.constant dense<0xFF800000> : vector<8x1xf32>
    %32 = vector.multi_reduction <maximumf>, %31, %cst_14 [1] : vector<8x8x1xf32> to vector<8x1xf32>
    %33 = vector.shape_cast %32 : vector<8x1xf32> to vector<8x1x1xf32>
    %34 = vector.broadcast %33 : vector<8x1x1xf32> to vector<8x8x1xf32>
    %35 = arith.subf %31, %34 : vector<8x8x1xf32>
    %36 = math.exp %35 : vector<8x8x1xf32>
    %cst_15 = arith.constant dense<0.000000e+00> : vector<8x1xf32>
    %37 = vector.multi_reduction <add>, %36, %cst_15 [1] : vector<8x8x1xf32> to vector<8x1xf32>
    %38 = vector.shape_cast %37 : vector<8x1xf32> to vector<8x1x1xf32>
    %39 = tpu.reciprocal %38 {approx = true} : vector<8x1x1xf32> -> vector<8x1x1xf32>
    %40 = vector.broadcast %39 : vector<8x1x1xf32> to vector<8x8x1xf32>
    %41 = arith.mulf %36, %40 : vector<8x8x1xf32>
    %42 = vector.broadcast %41 : vector<8x8x1xf32> to vector<8x8x32xf32>
    %43 = arith.mulf %42, %13 : vector<8x8x32xf32>
    %cst_16 = arith.constant dense<0.000000e+00> : vector<8x32xf32>
    %44 = vector.multi_reduction <add>, %43, %cst_16 [1] : vector<8x8x32xf32> to vector<8x32xf32>
    %c0_17 = arith.constant 0 : index
    %c0_18 = arith.constant 0 : index
    %45 = vector.load %arg6[%c0_17, %c0_18] : memref<8x32xf32, #tpu.memory_space<vmem>>, vector<8x32xf32>
    tpu.vector_store %arg6[%c0_17, %c0_18], %44 {strides = array<i32>} : memref<8x32xf32, #tpu.memory_space<vmem>>, vector<8x32xf32>,
    return
  }
  func.func @transform_0(%arg0: i32) -> (i32, i32, i32) {
    %c0_i32 = arith.constant 0 : i32
    %c0_i32_0 = arith.constant 0 : i32
    %c0_i32_1 = arith.constant 0 : i32
    return %arg0, %c0_i32, %c0_i32_0 : i32, i32, i32
  }
  func.func @transform_1(%arg0: i32) -> (i32, i32) {
    %c0_i32 = arith.constant 0 : i32
    %c0_i32_0 = arith.constant 0 : i32
    %c0_i32_1 = arith.constant 0 : i32
    return %c0_i32, %c0_i32_0 : i32, i32
  }
  func.func @transform_2(%arg0: i32) -> (i32, i32) {
    %c0_i32 = arith.constant 0 : i32
    %c0_i32_0 = arith.constant 0 : i32
    %c0_i32_1 = arith.constant 0 : i32
    return %c0_i32, %c0_i32_0 : i32, i32
  }
  func.func @transform_3(%arg0: i32) -> (i32, i32) {
    %c0_i32 = arith.constant 0 : i32
    %c0_i32_0 = arith.constant 0 : i32
    %c0_i32_1 = arith.constant 0 : i32
    return %c0_i32, %c0_i32_0 : i32, i32
  }
  func.func @transform_4(%arg0: i32) -> (i32, i32) {
    %c0_i32 = arith.constant 0 : i32
    %c0_i32_0 = arith.constant 0 : i32
    %c0_i32_1 = arith.constant 0 : i32
    return %c0_i32, %c0_i32_0 : i32, i32
  }
  func.func @transform_5(%arg0: i32) -> (i32, i32) {
    %c0_i32 = arith.constant 0 : i32
    %c0_i32_0 = arith.constant 0 : i32
    return %arg0, %c0_i32 : i32, i32
  }
}

</mosaic_0001>

<bundles_post_ra>
// kernel: tpu_custom_call.1
= control target key start
LH: loop header
LB: loop body
LE: loop exit
PB: predicated region body
PF: predicated region fallthrough
CT: control target
= control target key end

     0   :  { %s927_s20 = smov 0   ;;  %s1118_s0 = inlined_call_operand.vmem [shape: f32[64,8,16], index: 0, kind: input, shape index: {}]   ;;  %s1119_s1 = inlined_call_operand.vmem [shape: f32[17,32], index: 1, kind: input, shape index: {}]   ;;  %s1120_s2 = inlined_call_operand.vmem [shape: f32[1,32], index: 2, kind: input, shape index: {}]   ;;  %s1121_s3 = inlined_call_operand.vmem [shape: f32[1,32], index: 3, kind: input, shape index: {}]   ;;  %s1122_s4 = inlined_call_operand.<no memory space> [shape: f32[1,1], index: 4, kind: input, shape index: {}]   ;;  %s1123_s5 = inlined_call_operand.vmem [shape: f32[64,32], index: 5, kind: output, shape index: {}]  }
   0x1   :  { %10 = sst [smem:[#allocation2]] %s1122_s4 }
   0x2 LB: > { %s933_s21 = sadd.s32 4294967295, %s892_s20   ;;  %p800_p0 = scmp.ge.s32.totalorder %s892_s20, 1  ;;  %s892_s20 = sphi %s927_s20, %s16_s20  }
   0x3   : > { %p189_p1 = scmp.lt.s32.totalorder %s892_s20, 9 }
   0x5   : > { %p190_p2 = pnand %p800_p0, %p189_p1 }
   0x6   : > { %s801_s25 = sshll.u32 (!%p190_p2), %s933_s21, 3  ;;  %s509_s11 = sld [smem:[#allocation2]] (!%p190_p2) }
   0x7   : > { %193 = sbr.rel (%p190_p2) target bundleno = 467 (0x1d3), region = 40  ;;  %p217_p3 = scmp.lt.s32.totalorder (!%p190_p2), %s801_s25, 63 }
   0x8   : > { %p222_p4 = scmp.lt.s32.totalorder (!%p190_p2), %s933_s21, 7 }
   0xc   : > { %v227_v0 = vld [vmem:[%s1119_s1 + $0x8] sm:$0xff]  ;;  %v226_v1 = vld [vmem:[%s1119_s1] sm:$0xff]  ;;  %s1125_s25 = smov (!%p217_p3, %s801_s25), 63  ;;  %vm241_vm0 = vcmask 130048   ;;  %v804_v10 = vld [vmem:[%s1119_s1 + $0x10] ss:$0 sm:$0xff] }
   0xd   : > { %826 = vmatprep.subr.mxu0 %v227_v0  ;;  %842 = vmatprep.subr.mxu1 %v227_v0  ;;  %s802_s26 = sshll.u32 %s1125_s25, 3  ;;  %v961_v22 = vld [vmem:[%s1121_s3] ss:$0 sm:$0xff]  ;;  %vm444_vm3 = vcmask 261120   ;;  %vm405_vm5 = vcmask 253952   ;;  %vm727_vm11 = vcmask 1041409  }
   0xe   : > { %827 = vmatpush3.msra.mxu0 %v227_v0  ;;  %844 = vmatpush3.msra.mxu1 %v227_v0  ;;  %s220_s29 = scalar_lea.vmem %s1118_s0, %s802_s26  ;;  %v968_v25 = vld [vmem:[%s1120_s2] sm:$0x1]  ;;  %vm729_vm12 = vcmask 1042434   ;;  %vm731_vm13 = vcmask 1043459   ;;  %s1127_s21 = smov (!%p222_p4, %s933_s21), 7  ;;  %vm733_vm14 = vcmask 1044484  }
   0xf   : > { %828 = vmatprep.subr.mxu0 %v226_v1  ;;  %843 = vmatprep.subr.mxu1 %v226_v1  ;;  %v229_v2 = vld [vmem:[%s220_s29] sm:$0xff]  ;;  %v230_v4 = vld [vmem:[%s220_s29 + $0x8] sm:$0xff]  ;;  %v231_v6 = vld [vmem:[%s220_s29 + $0x10] sm:$0xff]  ;;  %vm735_vm15 = vcmask 1045509   ;;  %s803_s12 = sshll.u32 %s1127_s21, 3 }
  0x10   : > { %829 = vmatpush3.msra.mxu0 %v226_v1  ;;  %845 = vmatpush3.msra.mxu1 %v226_v1  ;;  %v233_v3 = vld [vmem:[%s220_s29 + $0x20] sm:$0xff]  ;;  %v234_v5 = vld [vmem:[%s220_s29 + $0x28] sm:$0xff]  ;;  %v235_v7 = vld [vmem:[%s220_s29 + $0x30] sm:$0xff]  ;;  %s225_s15 = scalar_lea.vmem %s1123_s5, %s803_s12 }
  0x11   : > { %830 = vmatprep.mubr.msk.f32.mxu0 %vm241_vm0, %v229_v2  ;;  %836 = vmatprep.mubr.msk.f32.mxu1 %vm241_vm0, %v233_v3  ;;  %v232_v8 = vld [vmem:[%s220_s29 + $0x18] sm:$0xff] }
  0x12   : > { %831 = vmatmul.mubr.msk.f32.vlgmr.msra.gmra.mxu0 %vm241_vm0, %v230_v4  ;;  %837 = vmatmul.mubr.msk.f32.vlgmr.msra.gmra.mxu1 %vm241_vm0, %v234_v5  ;;  %v236_v9 = vld [vmem:[%s220_s29 + $0x38] sm:$0xff] }
  0x13   : > { %833 = vmatprep.mubr.msk.f32.mxu0 %vm241_vm0, %v231_v6  ;;  %839 = vmatprep.mubr.msk.f32.mxu1 %vm241_vm0, %v235_v7 }
  0x16   : > { %834 = vmatmul.mubr.msk.f32.gmra.mxu0 %vm241_vm0, %v232_v8  ;;  %840 = vmatmul.mubr.msk.f32.gmra.mxu1 %vm241_vm0, %v236_v9  ;;  %vm737_vm0 = vcmask 1046534  }
  0xd2   : > { %v832_v11 = vpop.f32.mrf.mxu0  ;;  %v838_v12 = vpop.f32.mrf.mxu1 }
  0xd3   : > { %v338_v13 = vadd.f32 %v832_v11, %v804_v10  ;;  %v358_v14 = vadd.f32 %v838_v12, %v804_v10 }
  0xd4   : > { %v332_v15 = vpop.f32.mrf.mxu0  ;;  %v352_v16 = vpop.f32.mrf.mxu1 }
  0xd5   : > { %vm372_vm1 = vcmp.ge.f32.partialorder %v338_v13, 0.0  ;;  %v380_v17 = vmul.f32 0.2, %v338_v13  ;;  %vm376_vm2 = vcmp.ge.f32.partialorder %v358_v14, 0.0  ;;  %v384_v18 = vmul.f32 0.2, %v358_v14 }
  0xd6   : > { %v333_v19 = vadd.f32 %v804_v10, %v332_v15  ;;  %v353_v20 = vadd.f32 %v804_v10, %v352_v16  ;;  %v835_v21 = vpop.f32.mrf.mxu0  ;;  %v841_v42 = vpop.f32.mrf.mxu1 }
  0xd7   : > { %v348_v23 = vadd.f32 %v835_v21, %v804_v10  ;;  %v963_v24 = vsel %vm372_vm1, %v338_v13, %v380_v17  ;;  %v970_v27 = vsel %vm376_vm2, %v358_v14, %v384_v18  ;;  %v368_v47 = vadd.f32 %v841_v42, %v804_v10 }
  0xd8   : > { %vm375_vm4 = vcmp.ge.f32.partialorder %v353_v20, 0.0  ;;  %v383_v26 = vmul.f32 0.2, %v353_v20  ;;  %v379_v28 = vmul.f32 0.2, %v333_v19  ;;  %v342_v30 = vpop.f32.mrf.mxu0  ;;  %v437_v31 = vmul.f32 %v961_v22, %v963_v24  ;;  %v362_v49 = vpop.f32.mrf.mxu1 }
  0xd9   : > { %vm374_vm6 = vcmp.ge.f32.partialorder %v348_v23, 0.0  ;;  %v382_v29 = vmul.f32 0.2, %v348_v23  ;;  %vm371_vm7 = vcmp.ge.f32.partialorder %v333_v19, 0.0  ;;  %v398_v32 = vmul.f32 %v968_v25, %v963_v24 }
  0xda   : > { %v976_v33 = vsel %vm375_vm4, %v353_v20, %v383_v26  ;;  %v448_v34 = vsel %vm444_vm3, %v437_v31, 0.0  ;;  %v343_v36 = vadd.f32 %v804_v10, %v342_v30  ;;  %v402_v38 = vmul.f32 %v968_v25, %v970_v27 }
  0xdb   : > { %v440_v35 = vmul.f32 %v961_v22, %v976_v33  ;;  %449 = vadd.xlane.f32.xlu1 %v448_v34  ;;  %v409_v37 = vsel %vm405_vm5, %v398_v32, 0.0  ;;  %v984_v39 = vsel %vm374_vm6, %v348_v23, %v382_v29  ;;  %v988_v41 = vsel %vm371_vm7, %v333_v19, %v379_v28 }
  0xdc   : > { %410 = vadd.xlane.f32.xlu0 %v409_v37  ;;  %v400_v40 = vmul.f32 %v968_v25, %v984_v39  ;;  %v381_v44 = vmul.f32 0.2, %v343_v36  ;;  %v421_v45 = vsel %vm405_vm5, %v402_v38, 0.0  ;;  %v397_v46 = vmul.f32 %v968_v25, %v988_v41 }
  0xdd   : > { %v457_v43 = vsel %vm444_vm3, %v440_v35, 0.0  ;;  %vm373_vm8 = vcmp.ge.f32.partialorder %v343_v36, 0.0  ;;  %v439_v50 = vmul.f32 %v961_v22, %v984_v39  ;;  %v436_v52 = vmul.f32 %v961_v22, %v988_v41 }
  0xde   : > { %v415_v48 = vsel %vm405_vm5, %v400_v40, 0.0  ;;  %v406_v51 = vsel %vm405_vm5, %v397_v46, 0.0  ;;  %v1000_v53 = vsel %vm373_vm8, %v343_v36, %v381_v44  ;;  %v386_v54 = vmul.f32 0.2, %v368_v47 }
  0xdf   : > { %458 = vadd.xlane.f32.xlu1 %v457_v43  ;;  %v363_v55 = vadd.f32 %v804_v10, %v362_v49  ;;  %vm378_vm9 = vcmp.ge.f32.partialorder %v368_v47, 0.0  ;;  %v454_v56 = vsel %vm444_vm3, %v439_v50, 0.0  ;;  %v399_v57 = vmul.f32 %v968_v25, %v1000_v53 }
  0xe0   : > { %422 = vadd.xlane.f32.xlu0 %v421_v45  ;;  %v445_v58 = vsel %vm444_vm3, %v436_v52, 0.0  ;;  %v401_v59 = vmul.f32 %v968_v25, %v976_v33  ;;  %v1008_v61 = vsel %vm378_vm9, %v368_v47, %v386_v54  ;;  %v438_v63 = vmul.f32 %v961_v22, %v1000_v53 }
  0xe1   : > { %v385_v60 = vmul.f32 0.2, %v363_v55  ;;  %vm377_vm10 = vcmp.ge.f32.partialorder %v363_v55, 0.0  ;;  %v412_v62 = vsel %vm405_vm5, %v399_v57, 0.0  ;;  %v404_v1 = vmul.f32 %v968_v25, %v1008_v61 }
  0xe2   : > { %v418_v0 = vsel %vm405_vm5, %v401_v59, 0.0  ;;  %v451_v3 = vsel %vm444_vm3, %v438_v63, 0.0  ;;  %v441_v4 = vmul.f32 %v961_v22, %v970_v27  ;;  %v443_v8 = vmul.f32 %v961_v22, %v1008_v61 }
  0xe3   : > { %416 = vadd.xlane.f32.xlu1 %v415_v48  ;;  %v1016_v2 = vsel %vm377_vm10, %v363_v55, %v385_v60  ;;  %v427_v5 = vsel %vm405_vm5, %v404_v1, 0.0  ;;  %v469_v13 = vlaneseq  ;;  %v1035_v19 = vstv %s509_s11 }
  0xe4   : > { %407 = vadd.xlane.f32.xlu0 %v406_v51  ;;  %v403_v6 = vmul.f32 %v968_v25, %v1016_v2  ;;  %v460_v7 = vsel %vm444_vm3, %v441_v4, 0.0  ;;  %v442_v10 = vmul.f32 %v961_v22, %v1016_v2  ;;  %v466_v11 = vsel %vm444_vm3, %v443_v8, 0.0 }
  0xe5   : > { %v470_v14 = vshrl.u32 %v469_v13, 7  ;;  %vm739_vm1 = vcmask 1047559  }
  0xe6   : > { %v424_v9 = vsel %vm405_vm5, %v403_v6, 0.0  ;;  %v463_v12 = vsel %vm444_vm3, %v442_v10, 0.0 }
  0xe7   : > { %455 = vadd.xlane.f32.xlu1 %v454_v56  ;;  %v1032_v15 = vsub.s32 0, %v470_v14 }
  0xe8   : > { %446 = vadd.xlane.f32.xlu0 %v445_v58 }
  0xeb   : > { %413 = vadd.xlane.f32.xlu1 %v412_v62 }
  0xec   : > { %419 = vadd.xlane.f32.xlu0 %v418_v0 }
  0xef   : > { %452 = vadd.xlane.f32.xlu1 %v451_v3 }
  0xf0   : > { %428 = vadd.xlane.f32.xlu0 %v427_v5 }
  0xf3   : > { %461 = vadd.xlane.f32.xlu1 %v460_v7 }
  0xf4   : > { %425 = vadd.xlane.f32.xlu0 %v424_v9 }
  0xf7   : > { %467 = vadd.xlane.f32.xlu1 %v466_v11 }
  0xf8   : > { %464 = vadd.xlane.f32.xlu0 %v463_v12 }
 0x164   : > { %v450_v16 = vpop.xlane.xlu1 %449 }
 0x165   : > { %v411_v17 = vpop.xlane.xlu0 %410 }
 0x166   : > { %v476_v18 = vrot.slane %v411_v17, %v1032_v15 }
 0x168   : > { %v502_v20 = vadd.f32 %v476_v18, %v450_v16  ;;  %v459_v21 = vpop.xlane.xlu1 %458 }
 0x169   : > { %v423_v22 = vpop.xlane.xlu0 %422 }
 0x16a   : > { %v512_v23 = vadd.f32 %v1035_v19, %v502_v20  ;;  %v492_v0 = vrot.slane %v423_v22, %v1032_v15 }
 0x16c   : > { %v525_v25 = vrot.slane %v512_v23, 4  ;;  %v417_v26 = vpop.xlane.xlu1 %416 }
 0x16d   : > { %v408_v28 = vpop.xlane.xlu0 %407  ;;  %v484_v30 = vrot.slane %v417_v26, %v1032_v15 }
 0x16e   : > { %v526_v29 = vmax.f32 %v512_v23, %v525_v25  ;;  %v472_v32 = vrot.slane %v408_v28, %v1032_v15 }
 0x170   : > { %v527_v31 = vrot.slane %v526_v29, 2  ;;  %v456_v34 = vpop.xlane.xlu1 %455 }
 0x171   : > { %v504_v35 = vadd.f32 %v484_v30, %v456_v34  ;;  %v447_v36 = vpop.xlane.xlu0 %446 }
 0x172   : > { %v528_v37 = vmax.f32 %v526_v29, %v527_v31  ;;  %v501_v38 = vadd.f32 %v472_v32, %v447_v36 }
 0x173   : > { %v514_v40 = vadd.f32 %v1035_v19, %v504_v35 }
 0x174   : > { %v529_v42 = vrot.slane %v528_v37, 1  ;;  %v511_v43 = vadd.f32 %v1035_v19, %v501_v38  ;;  %v414_v44 = vpop.xlane.xlu1 %413 }
 0x175   : > { %v537_v45 = vrot.slane %v514_v40, 4  ;;  %v420_v46 = vpop.xlane.xlu0 %419  ;;  %v480_v51 = vrot.slane %v414_v44, %v1032_v15 }
 0x176   : > { %v530_v47 = vmax.f32 %v528_v37, %v529_v42  ;;  %v519_v48 = vrot.slane %v511_v43, 4  ;;  %v488_v49 = vrot.slane %v420_v46, %v1032_v15 }
 0x177   : > { %v538_v50 = vmax.f32 %v514_v40, %v537_v45 }
 0x178   : > { %v568_v52 = vsub.f32 %v512_v23, %v530_v47  ;;  %v520_v54 = vmax.f32 %v511_v43, %v519_v48  ;;  %v505_v55 = vadd.f32 %v488_v49, %v459_v21  ;;  %v453_v56 = vpop.xlane.xlu1 %452 }
 0x179   : > { %v539_v57 = vrot.slane %v538_v50, 2  ;;  %v503_v58 = vadd.f32 %v480_v51, %v453_v56  ;;  %v429_v59 = vpop.xlane.xlu0 %428 }
 0x17a   : > { %v577_v60 = vmul.f32 1.442695, %v568_v52  ;;  %v521_v62 = vrot.slane %v520_v54, 2  ;;  %v515_v63 = vadd.f32 %v1035_v19, %v505_v55  ;;  %v500_v16 = vrot.slane %v429_v59, %v1032_v15 }
 0x17b   : > { %v540_v1 = vmax.f32 %v538_v50, %v539_v57  ;;  %v513_v3 = vadd.f32 %v1035_v19, %v503_v58 }
 0x17c   : > { %854 = vpow2.f32 %v577_v60  ;;  %v522_v4 = vmax.f32 %v520_v54, %v521_v62  ;;  %v543_v5 = vrot.slane %v515_v63, 4  ;;  %v462_v6 = vpop.xlane.xlu1 %461 }
 0x17d   : > { %v541_v7 = vrot.slane %v540_v1, 1  ;;  %v531_v8 = vrot.slane %v513_v3, 4  ;;  %v506_v9 = vadd.f32 %v492_v0, %v462_v6  ;;  %v426_v10 = vpop.xlane.xlu0 %425 }
 0x17e   : > { %v523_v11 = vrot.slane %v522_v4, 1  ;;  %v544_v12 = vmax.f32 %v515_v63, %v543_v5  ;;  %v496_v21 = vrot.slane %v426_v10, %v1032_v15 }
 0x17f   : > { %v542_v13 = vmax.f32 %v540_v1, %v541_v7  ;;  %v532_v14 = vmax.f32 %v513_v3, %v531_v8  ;;  %v516_v17 = vadd.f32 %v1035_v19, %v506_v9 }
 0x180   : > { %v524_v18 = vmax.f32 %v522_v4, %v523_v11  ;;  %v545_v20 = vrot.slane %v544_v12, 2  ;;  %v468_v22 = vpop.xlane.xlu1 %467 }
 0x181   : > { %v570_v23 = vsub.f32 %v514_v40, %v542_v13  ;;  %v533_v25 = vrot.slane %v532_v14, 2  ;;  %v549_v26 = vrot.slane %v516_v17, 4  ;;  %v508_v28 = vadd.f32 %v500_v16, %v468_v22  ;;  %v465_v29 = vpop.xlane.xlu0 %464 }
 0x182   : > { %v567_v30 = vsub.f32 %v511_v43, %v524_v18  ;;  %v546_v31 = vmax.f32 %v544_v12, %v545_v20  ;;  %v507_v32 = vadd.f32 %v496_v21, %v465_v29 }
 0x183   : > { %v581_v34 = vmul.f32 1.442695, %v570_v23  ;;  %v534_v35 = vmax.f32 %v532_v14, %v533_v25  ;;  %v550_v36 = vmax.f32 %v516_v17, %v549_v26  ;;  %v518_v37 = vadd.f32 %v1035_v19, %v508_v28 }
 0x184   : > { %v575_v38 = vmul.f32 1.442695, %v567_v30  ;;  %v547_v42 = vrot.slane %v546_v31, 1  ;;  %v517_v44 = vadd.f32 %v1035_v19, %v507_v32 }
 0x185   : > { %856 = vpow2.f32 %v581_v34  ;;  %v535_v15 = vrot.slane %v534_v35, 1  ;;  %v551_v45 = vrot.slane %v550_v36, 2  ;;  %v561_v40 = vrot.slane %v518_v37, 4 }
 0x186   : > { %858 = vpow2.f32 %v575_v38  ;;  %v548_v46 = vmax.f32 %v546_v31, %v547_v42  ;;  %v555_v47 = vrot.slane %v517_v44, 4 }
 0x187   : > { %v536_v48 = vmax.f32 %v534_v35, %v535_v15  ;;  %v552_v43 = vmax.f32 %v550_v36, %v551_v45  ;;  %v562_v49 = vmax.f32 %v518_v37, %v561_v40 }
 0x188   : > { %v571_v50 = vsub.f32 %v515_v63, %v548_v46  ;;  %v556_v51 = vmax.f32 %v517_v44, %v555_v47 }
 0x189   : > { %v1052_v52 = vpop.eup %854  ;;  %v569_v54 = vsub.f32 %v513_v3, %v536_v48  ;;  %v553_v55 = vrot.slane %v552_v43, 1  ;;  %v563_v56 = vrot.slane %v562_v49, 2 }
 0x18a   : > { %v597_v57 = vrot.slane %v1052_v52, 4  ;;  %v583_v19 = vmul.f32 1.442695, %v571_v50  ;;  %v557_v58 = vrot.slane %v556_v51, 2 }
 0x18b   : > { %v579_v59 = vmul.f32 1.442695, %v569_v54  ;;  %v554_v60 = vmax.f32 %v552_v43, %v553_v55  ;;  %v564_v62 = vmax.f32 %v562_v49, %v563_v56 }
 0x18c   : > { %v598_v0 = vadd.f32 %v1052_v52, %v597_v57  ;;  %860 = vpow2.f32 %v583_v19  ;;  %v558_v1 = vmax.f32 %v556_v51, %v557_v58 }
 0x18d   : > { %862 = vpow2.f32 %v579_v59  ;;  %v572_v4 = vsub.f32 %v516_v17, %v554_v60  ;;  %v565_v63 = vrot.slane %v564_v62, 1 }
 0x18e   : > { %v599_v5 = vrot.slane %v598_v0, 2  ;;  %v559_v6 = vrot.slane %v558_v1, 1 }
 0x18f   : > { %v585_v7 = vmul.f32 1.442695, %v572_v4  ;;  %v566_v3 = vmax.f32 %v564_v62, %v565_v63 }
 0x190   : > { %v600_v8 = vadd.f32 %v599_v5, %v598_v0  ;;  %v560_v9 = vmax.f32 %v558_v1, %v559_v6 }
 0x191   : > { %864 = vpow2.f32 %v585_v7  ;;  %v574_v10 = vsub.f32 %v518_v37, %v566_v3 }
 0x192   : > { %v1056_v11 = vpop.eup %856  ;;  %v601_v12 = vrot.slane %v600_v8, 1  ;;  %v573_v13 = vsub.f32 %v517_v44, %v560_v9 }
 0x193   : > { %v1058_v14 = vpop.eup %858  ;;  %v609_v16 = vrot.slane %v1056_v11, 4  ;;  %v589_v18 = vmul.f32 1.442695, %v574_v10 }
 0x194   : > { %v602_v20 = vadd.f32 %v601_v12, %v600_v8  ;;  %v591_v17 = vrot.slane %v1058_v14, 4  ;;  %v587_v21 = vmul.f32 1.442695, %v573_v13 }
 0x195   : > { %v610_v22 = vadd.f32 %v1056_v11, %v609_v16  ;;  %866 = vpow2.f32 %v589_v18 }
 0x196   : > { %868 = vrcp.f32 %v602_v20  ;;  %v592_v23 = vadd.f32 %v1058_v14, %v591_v17 }
 0x197   : > { %v611_v25 = vrot.slane %v610_v22, 2  ;;  %870 = vpow2.f32 %v587_v21 }
 0x198   : > { %v593_v26 = vrot.slane %v592_v23, 2 }
 0x199   : > { %v1064_v28 = vpop.eup %860  ;;  %v612_v29 = vadd.f32 %v611_v25, %v610_v22 }
 0x19a   : > { %v1066_v30 = vpop.eup %862  ;;  %v594_v31 = vadd.f32 %v593_v26, %v592_v23  ;;  %v615_v32 = vrot.slane %v1064_v28, 4 }
 0x19b   : > { %v613_v34 = vrot.slane %v612_v29, 1  ;;  %v603_v35 = vrot.slane %v1066_v30, 4 }
 0x19c   : > { %v595_v36 = vrot.slane %v594_v31, 1  ;;  %v616_v37 = vadd.f32 %v1064_v28, %v615_v32 }
 0x19d   : > { %v614_v38 = vadd.f32 %v613_v34, %v612_v29  ;;  %v604_v42 = vadd.f32 %v1066_v30, %v603_v35 }
 0x19e   : > { %v1072_v44 = vpop.eup %864  ;;  %v596_v15 = vadd.f32 %v595_v36, %v594_v31  ;;  %v617_v45 = vrot.slane %v616_v37, 2 }
 0x19f   : > { %872 = vrcp.f32 %v614_v38  ;;  %v605_v40 = vrot.slane %v604_v42, 2  ;;  %v621_v46 = vrot.slane %v1072_v44, 4 }
 0x1a0   : > { %874 = vrcp.f32 %v596_v15  ;;  %v618_v47 = vadd.f32 %v617_v45, %v616_v37 }
 0x1a1   : > { %v606_v48 = vadd.f32 %v605_v40, %v604_v42  ;;  %v622_v43 = vadd.f32 %v1072_v44, %v621_v46 }
 0x1a2   : > { %v1076_v49 = vpop.eup %866  ;;  %v619_v50 = vrot.slane %v618_v47, 1 }
 0x1a3   : > { %v869_v51 = vpop.eup %868  ;;  %v607_v54 = vrot.slane %v606_v48, 1  ;;  %v623_v55 = vrot.slane %v622_v43, 2  ;;  %v633_v56 = vrot.slane %v1076_v49, 4 }
 0x1a4   : > { %v1079_v57 = vpop.eup %870  ;;  %v648_v19 = vmul.f32 %v869_v51, %v1052_v52  ;;  %v620_v58 = vadd.f32 %v619_v50, %v618_v47 }
 0x1a5   : > { %v608_v59 = vadd.f32 %v607_v54, %v606_v48  ;;  %v624_v60 = vadd.f32 %v623_v55, %v622_v43  ;;  %v634_v62 = vadd.f32 %v1076_v49, %v633_v56  ;;  %v627_v0 = vrot.slane %v1079_v57, 4 }
 0x1a6   : > { %876 = vrcp.f32 %v620_v58  ;;  %v656_v5 = vmul.f32 %v648_v19, %v963_v24 }
 0x1a7   : > { %878 = vrcp.f32 %v608_v59  ;;  %v625_v1 = vrot.slane %v624_v60, 1  ;;  %v635_v4 = vrot.slane %v634_v62, 2  ;;  %v628_v63 = vadd.f32 %v1079_v57, %v627_v0 }
 0x1a8   : > { %v670_v10 = vsel %vm444_vm3, %v656_v5, 0.0 }
 0x1a9   : > { %v626_v6 = vadd.f32 %v625_v1, %v624_v60  ;;  %v636_v7 = vadd.f32 %v635_v4, %v634_v62  ;;  %v629_v3 = vrot.slane %v628_v63, 2  ;;  %v671_v17 = vrot.slane %v670_v10, 4 }
 0x1ab   : > { %880 = vrcp.f32 %v626_v6  ;;  %v637_v52 = vrot.slane %v636_v7, 1  ;;  %v630_v8 = vadd.f32 %v629_v3, %v628_v63  ;;  %v672_v29 = vadd.f32 %v671_v17, %v670_v10 }
 0x1ac   : > { %v873_v9 = vpop.eup %872 }
 0x1ad   : > { %v875_v12 = vpop.eup %874  ;;  %v650_v13 = vmul.f32 %v873_v9, %v1056_v11  ;;  %v638_v16 = vadd.f32 %v637_v52, %v636_v7  ;;  %v631_v18 = vrot.slane %v630_v8, 1  ;;  %v673_v36 = vrot.slane %v672_v29, 2 }
 0x1ae   : > { %v647_v20 = vmul.f32 %v875_v12, %v1058_v14 }
 0x1af   : > { %v658_v21 = vmul.f32 %v650_v13, %v984_v39  ;;  %882 = vrcp.f32 %v638_v16  ;;  %v632_v24 = vadd.f32 %v631_v18, %v630_v8  ;;  %v674_v48 = vadd.f32 %v673_v36, %v672_v29 }
 0x1b0   : > { %v655_v22 = vmul.f32 %v647_v20, %v988_v41 }
 0x1b1   : > { %v684_v23 = vsel %vm444_vm3, %v658_v21, 0.0  ;;  %884 = vrcp.f32 %v632_v24  ;;  %v675_v60 = vrot.slane %v674_v48, 1 }
 0x1b2   : > { %v663_v25 = vsel %vm444_vm3, %v655_v22, 0.0  ;;  %v685_v31 = vrot.slane %v684_v23, 4 }
 0x1b3   : > { %v877_v26 = vpop.eup %876  ;;  %v664_v11 = vrot.slane %v663_v25, 4  ;;  %v676_v52 = vadd.f32 %v675_v60, %v674_v48 }
 0x1b4   : > { %v879_v32 = vpop.eup %878  ;;  %v651_v34 = vmul.f32 %v877_v26, %v1064_v28  ;;  %v686_v37 = vadd.f32 %v685_v31, %v684_v23 }
 0x1b5   : > { %v665_v14 = vadd.f32 %v664_v11, %v663_v25  ;;  %v649_v35 = vmul.f32 %v879_v32, %v1066_v30 }
 0x1b6   : > { %v659_v39 = vmul.f32 %v651_v34, %v976_v33  ;;  %v687_v43 = vrot.slane %v686_v37, 2 }
 0x1b7   : > { %v666_v41 = vrot.slane %v665_v14, 2  ;;  %v657_v38 = vmul.f32 %v649_v35, %v1000_v53 }
 0x1b8   : > { %v881_v42 = vpop.eup %880  ;;  %v691_v15 = vsel %vm444_vm3, %v659_v39, 0.0  ;;  %v688_v62 = vadd.f32 %v687_v43, %v686_v37 }
 0x1b9   : > { %v667_v45 = vadd.f32 %v666_v41, %v665_v14  ;;  %v692_v40 = vrot.slane %v691_v15, 4  ;;  %v677_v46 = vsel %vm444_vm3, %v657_v38, 0.0  ;;  %v652_v47 = vmul.f32 %v881_v42, %v1072_v44 }
 0x1ba   : > { %v678_v28 = vrot.slane %v677_v46, 4  ;;  %v689_v8 = vrot.slane %v688_v62, 1 }
 0x1bb   : > { %v693_v30 = vadd.f32 %v692_v40, %v691_v15  ;;  %v660_v33 = vmul.f32 %v652_v47, %v970_v27  ;;  %v668_v54 = vrot.slane %v667_v45, 1 }
 0x1bc   : > { %v883_v50 = vpop.eup %882  ;;  %v679_v51 = vadd.f32 %v678_v28, %v677_v46  ;;  %v690_v17 = vadd.f32 %v689_v8, %v688_v62 }
 0x1bd   : > { %v698_v53 = vsel %vm444_vm3, %v660_v33, 0.0  ;;  %v654_v55 = vmul.f32 %v883_v50, %v1076_v49  ;;  %v694_v19 = vrot.slane %v693_v30, 2  ;;  %v669_v27 = vadd.f32 %v668_v54, %v667_v45 }
 0x1be   : > { %v885_v56 = vpop.eup %884  ;;  %v680_v58 = vrot.slane %v679_v51, 2  ;;  %v699_v59 = vrot.slane %v698_v53, 4 }
 0x1bf   : > { %v662_v44 = vmul.f32 %v654_v55, %v1008_v61  ;;  %v653_v0 = vmul.f32 %v885_v56, %v1079_v57  ;;  %v695_v49 = vadd.f32 %v694_v19, %v693_v30  ;;  %v728_v13 = vsel %vm727_vm11, %v676_v52, %v669_v27 }
 0x1c0   : > { %v681_v1 = vadd.f32 %v680_v58, %v679_v51  ;;  %v700_v4 = vadd.f32 %v699_v59, %v698_v53 }
 0x1c1   : > { %v712_v63 = vsel %vm444_vm3, %v662_v44, 0.0  ;;  %v661_v5 = vmul.f32 %v653_v0, %v1016_v2  ;;  %v696_v16 = vrot.slane %v695_v49, 1 }
 0x1c2   : > { %v682_v6 = vrot.slane %v681_v1, 1  ;;  %v701_v7 = vrot.slane %v700_v4, 2  ;;  %v713_v3 = vrot.slane %v712_v63, 4 }
 0x1c3   : > { %v705_v61 = vsel %vm444_vm3, %v661_v5, 0.0  ;;  %v697_v25 = vadd.f32 %v696_v16, %v695_v49 }
 0x1c4   : > { %v683_v57 = vadd.f32 %v682_v6, %v681_v1  ;;  %v702_v9 = vadd.f32 %v701_v7, %v700_v4  ;;  %v714_v10 = vadd.f32 %v713_v3, %v712_v63  ;;  %v706_v12 = vrot.slane %v705_v61, 4 }
 0x1c6   : > { %v730_v2 = vsel %vm729_vm12, %v683_v57, %v728_v13  ;;  %v715_v18 = vrot.slane %v714_v10, 2  ;;  %v707_v20 = vadd.f32 %v706_v12, %v705_v61  ;;  %v703_v21 = vrot.slane %v702_v9, 1 }
 0x1c7   : > { %v732_v23 = vsel %vm731_vm13, %v690_v17, %v730_v2 }
 0x1c8   : > { %v716_v24 = vadd.f32 %v715_v18, %v714_v10  ;;  %v708_v22 = vrot.slane %v707_v20, 2  ;;  %v704_v31 = vadd.f32 %v703_v21, %v702_v9  ;;  %v734_v11 = vsel %vm733_vm14, %v697_v25, %v732_v23 }
 0x1ca   : > { %v717_v26 = vrot.slane %v716_v24, 1  ;;  %v709_v29 = vadd.f32 %v708_v22, %v707_v20  ;;  %v736_v35 = vsel %vm735_vm15, %v704_v31, %v734_v11 }
 0x1cc   : > { %v710_v32 = vrot.slane %v709_v29, 1  ;;  %v718_v34 = vadd.f32 %v717_v26, %v716_v24 }
 0x1ce   : > { %v711_v14 = vadd.f32 %v710_v32, %v709_v29 }
 0x1d0   : > { %v738_v39 = vsel %vm737_vm0, %v711_v14, %v736_v35 }
 0x1d1   : > { %v740_v36 = vsel %vm739_vm1, %v718_v34, %v738_v39 }
 0x1d2   : > { %742 = vst.msk [vmem:[%s225_s15] sm:$0xff] %vm444_vm3, %v740_v36 }
 0x1d3 PF: > { %s16_s20 = sadd.s32 1, %s892_s20  }
 0x1d4   : > { %p13_p5 = scmp.ge.s32.totalorder %s16_s20, 10  }
 0x1d6   :  { %15 = sbr.rel (!%p13_p5) target bundleno = 2 (0x2), region = 70 }

</bundles_post_ra>
